<compile_context>
chip_gen: v7x
topology: tpu7x:2x2x1
jax: 0.10.0
libtpu: 0.0.40
codegen_flags: <defaults>
</compile_context>

<pallas_src>
import jax
import jax.numpy as jnp
from jax.experimental import pallas as pl
from jax.experimental.pallas import tpu as pltpu


def _round_up(n, m):
    return ((n + m - 1) // m) * m


def _cdiv(a, b):
    return -(-a // b)


def _mlp_kernel(x_ref, w_ref, b_ref, o_ref):
    # x_ref: (TB, K)   w_ref: (K, N)   b_ref: (1, N) f32   o_ref: (TB, N)
    x = x_ref[...]
    w = w_ref[...]
    if x.dtype != w.dtype:
        x = x.astype(w.dtype)          # in-kernel cast: VPU work hidden under DMA slack
    z = jnp.dot(x, w, preferred_element_type=jnp.float32)   # MXU, f32 accumulate
    z = z + b_ref[...]                 # broadcast (1, N) over rows, f32
    o_ref[...] = jnp.maximum(z, 0.0).astype(o_ref.dtype)


def fuse_params(w_shards, b_shards, *, compute_dtype=jnp.bfloat16):
    """Fuse the per-shard torch.nn.Linear parameters ONCE (not per forward).

    w_shards: list of (N_part, K) weights (torch Linear layout).
    b_shards: list of (N_part,) biases.
    Returns (w_fused (K, N) compute_dtype, b_fused (1, N) f32).
    """
    w = jnp.concatenate([ws.T for ws in w_shards], axis=1)   # (K, N)
    b = jnp.concatenate(b_shards, axis=0)                    # (N,)
    return w.astype(compute_dtype), b.astype(jnp.float32)[None, :]


def distr_mlp_forward(x, w_fused, b_fused, *, tile_b=1024, out_dtype=jnp.float32):
    """x: (B, K).  w_fused: (K, N) pre-fused weight.  b_fused: (1, N) f32.
    Returns (B, N) out_dtype == cat([relu(x @ Wi.T + bi) for i], axis=1)."""
    B, K = x.shape
    Kw, N = w_fused.shape
    assert K == Kw, (K, Kw)

    x_isz = jnp.dtype(x.dtype).itemsize
    w_isz = jnp.dtype(w_fused.dtype).itemsize
    o_isz = jnp.dtype(out_dtype).itemsize

    # Row alignment for the streamed blocks (sub-32-bit dtypes pack along sublanes).
    align = max(8 * (4 // x_isz), 8 * (4 // o_isz))

    # Batch tile: big (amortizes ~0.35us/grid-step overhead, fills the MXU M dim),
    # shrunk for tiny batches, and capped so the batch grid has >= 2 steps whenever
    # B allows so both v7x TensorCores get a share of the "parallel" axis.
    tile_b = min(tile_b, _round_up(B, align))
    if B > 8:
        tile_b = min(tile_b, _round_up(_cdiv(B, 2), align))
    tile_b = max(align, _round_up(tile_b, align))
    grid = (_cdiv(B, tile_b),)   # ragged B: last block is partial -> masked stores

    # VMEM budget: double-buffered x/out tiles + (double-buffered) resident W/b.
    tile_bytes = (2 * tile_b * K * x_isz          # x tiles
                  + 2 * tile_b * N * o_isz        # out tiles
                  + 2 * K * N * w_isz             # weight (resident)
                  + 2 * N * 4)                    # bias   (resident, f32)
    vmem_limit = int(min(max(2 * tile_bytes, 32 * 1024 * 1024), 64 * 1024 * 1024))

    cost = pl.CostEstimate(
        flops=2 * B * K * N,
        transcendentals=0,
        bytes_accessed=(B * K * x_isz + K * N * w_isz + N * 4 + B * N * o_isz),
    )

    return pl.pallas_call(
        _mlp_kernel,
        out_shape=jax.ShapeDtypeStruct((B, N), out_dtype),
        grid_spec=pltpu.PrefetchScalarGridSpec(
            num_scalar_prefetch=0,
            grid=grid,
            in_specs=[
                pl.BlockSpec((tile_b, K), lambda i: (i, 0)),   # x tile (streams)
                pl.BlockSpec((K, N), lambda i: (0, 0)),        # weight (resident)
                pl.BlockSpec((1, N), lambda i: (0, 0)),        # bias (resident)
            ],
            out_specs=pl.BlockSpec((tile_b, N), lambda i: (i, 0)),
        ),
        compiler_params=pltpu.CompilerParams(
            dimension_semantics=("parallel",),   # megacore sharding over batch tiles
            vmem_limit_bytes=vmem_limit,
        ),
        cost_estimate=cost,
    )(x, w_fused, b_fused)


if __name__ == "__main__":
    # Module hyperparams (DistrMLP.__init__ defaults).
    input_shape = 128
    output_shape = 64
    num_gpus = 2
    n_part = output_shape // num_gpus

    key = jax.random.PRNGKey(0)
    kx, *kws = jax.random.split(key, 1 + num_gpus)

    # Deterministic torch.nn.Linear-style init (uniform bound 1/sqrt(fan_in)).
    bound = 1.0 / jnp.sqrt(jnp.float32(input_shape))
    w_shards, b_shards = [], []
    for idx in range(num_gpus):
        kw, kb = jax.random.split(kws[idx])
        w_shards.append(jax.random.uniform(
            kw, (n_part, input_shape), dtype=jnp.float32, minval=-bound, maxval=bound))
        b_shards.append(jax.random.uniform(
            kb, (n_part,), dtype=jnp.float32, minval=-bound, maxval=bound))

    def reference(xv):
        return jnp.concatenate(
            [jnp.maximum(xv @ w.T + b, 0.0) for w, b in zip(w_shards, b_shards)],
            axis=1)

    # --- f32 operand path, ragged batch (200 rows -> grid of 2, last tile masked) ---
    w_f32, b_f32 = fuse_params(w_shards, b_shards, compute_dtype=jnp.float32)
    x_big = jax.random.normal(kx, (200, input_shape), dtype=jnp.float32)
    out_f32 = jax.block_until_ready(distr_mlp_forward(x_big, w_f32, b_f32))
    ref_big = reference(x_big)
    assert out_f32.shape == (200, output_shape), out_f32.shape
    assert jnp.allclose(out_f32, ref_big, atol=1e-5, rtol=1e-5), "f32 mismatch (ragged batch)"

    # Tiny batch: tile auto-shrinks to 8, single grid step.
    x_small = x_big[:8]
    out_small = jax.block_until_ready(distr_mlp_forward(x_small, w_f32, b_f32))
    assert out_small.shape == (8, output_shape), out_small.shape
    assert jnp.allclose(out_small, reference(x_small), atol=1e-5, rtol=1e-5), \
        "f32 mismatch (small batch)"

    # --- bf16 operand default: f32 x handed in, cast happens inside the kernel -------
    w_bf16, b_bf16 = fuse_params(w_shards, b_shards)   # compute_dtype=bf16 default
    out_bf16 = jax.block_until_ready(distr_mlp_forward(x_big, w_bf16, b_bf16))
    assert out_bf16.shape == (200, output_shape), out_bf16.shape
    assert jnp.allclose(out_bf16, ref_big, atol=5e-2, rtol=5e-2), "bf16 operand mismatch"

    # --- bf16 output path (halves dominant output HBM stream; biggest win on v5e) ----
    x_256 = jax.random.normal(jax.random.fold_in(kx, 1), (256, input_shape),
                              dtype=jnp.float32)
    out_bf16o = jax.block_until_ready(
        distr_mlp_forward(x_256, w_bf16, b_bf16, out_dtype=jnp.bfloat16))
    assert out_bf16o.shape == (256, output_shape), out_bf16o.shape
    assert out_bf16o.dtype == jnp.bfloat16
    assert jnp.allclose(out_bf16o.astype(jnp.float32), reference(x_256),
                        atol=5e-2, rtol=5e-2), "bf16 output mismatch"

    print("KERNEL_OK")
</pallas_src>

<mosaic_0001>
module attributes {stable_mosaic.version = 11 : i64} {
  func.func @_mlp_kernel(%arg0: i32, %arg1: memref<104x128xf32, #tpu.memory_space<vmem>>, %arg2: memref<128x64xf32, #tpu.memory_space<vmem>>, %arg3: memref<1x64xf32, #tpu.memory_space<vmem>>, %arg4: memref<104x64xf32, #tpu.memory_space<vmem>>) attributes {dimension_semantics = [#tpu.dimension_semantics<parallel>], iteration_bounds = array<i64: 2>, scalar_prefetch = 0 : i64, scratch_operands = 0 : i64, tpu.core_type = #tpu.core_type<tc>, window_params = [{transform_indices = @transform_0, window_bounds = array<i64: 104, 128>}, {pipeline_mode = #tpu.pipeline_mode<synchronous>, transform_indices = @transform_1, window_bounds = array<i64: 128, 64>}, {pipeline_mode = #tpu.pipeline_mode<synchronous>, transform_indices = @transform_2, window_bounds = array<i64: 1, 64>}, {transform_indices = @transform_3, window_bounds = array<i64: 104, 64>}]} {
    %c0 = arith.constant 0 : index
    %c0_0 = arith.constant 0 : index
    %0 = vector.load %arg1[%c0, %c0_0] : memref<104x128xf32, #tpu.memory_space<vmem>>, vector<104x128xf32>
    %c0_1 = arith.constant 0 : index
    %c0_2 = arith.constant 0 : index
    %1 = vector.load %arg2[%c0_1, %c0_2] : memref<128x64xf32, #tpu.memory_space<vmem>>, vector<128x64xf32>
    %cst = arith.constant dense<0.000000e+00> : vector<104x64xf32>
    %2 = tpu.matmul %0, %1, %cst {dimension_numbers = #tpu.dot_dimension_numbers<[1], [0], [0], [1], [0, 0, 1, 1], [], []>} : vector<104x128xf32>, vector<128x64xf32>, vector<104x64xf32> -> vector<104x64xf32>
    %c0_3 = arith.constant 0 : index
    %c0_4 = arith.constant 0 : index
    %3 = vector.load %arg3[%c0_3, %c0_4] : memref<1x64xf32, #tpu.memory_space<vmem>>, vector<1x64xf32>
    %4 = vector.broadcast %3 : vector<1x64xf32> to vector<104x64xf32>
    %5 = arith.addf %2, %4 : vector<104x64xf32>
    %cst_5 = arith.constant 0.000000e+00 : f32
    %6 = vector.broadcast %cst_5 : f32 to vector<104x64xf32>
    %7 = arith.maximumf %5, %6 : vector<104x64xf32>
    %c0_6 = arith.constant 0 : index
    %c0_7 = arith.constant 0 : index
    %8 = vector.load %arg4[%c0_6, %c0_7] : memref<104x64xf32, #tpu.memory_space<vmem>>, vector<104x64xf32>
    tpu.vector_store %arg4[%c0_6, %c0_7], %7 {strides = array<i32>} : memref<104x64xf32, #tpu.memory_space<vmem>>, vector<104x64xf32>,
    return
  }
  func.func @transform_0(%arg0: i32) -> (i32, i32) {
    %c0_i32 = arith.constant 0 : i32
    %c0_i32_0 = arith.constant 0 : i32
    return %arg0, %c0_i32 : i32, i32
  }
  func.func @transform_1(%arg0: i32) -> (i32, i32) {
    %c0_i32 = arith.constant 0 : i32
    %c0_i32_0 = arith.constant 0 : i32
    %c0_i32_1 = arith.constant 0 : i32
    return %c0_i32, %c0_i32_0 : i32, i32
  }
  func.func @transform_2(%arg0: i32) -> (i32, i32) {
    %c0_i32 = arith.constant 0 : i32
    %c0_i32_0 = arith.constant 0 : i32
    %c0_i32_1 = arith.constant 0 : i32
    return %c0_i32, %c0_i32_0 : i32, i32
  }
  func.func @transform_3(%arg0: i32) -> (i32, i32) {
    %c0_i32 = arith.constant 0 : i32
    %c0_i32_0 = arith.constant 0 : i32
    return %arg0, %c0_i32 : i32, i32
  }
}

</mosaic_0001>

<bundles_post_ra>
// kernel: tpu_custom_call.1
= control target key start
LH: loop header
LB: loop body
LE: loop exit
PB: predicated region body
PF: predicated region fallthrough
CT: control target
= control target key end

     0   :  { %8 = vsyncpa [#allocation3], 0  ;;  %s1422_s0 = inlined_call_operand.hbm [shape: f32[200,128], index: 0, kind: input, shape index: {}]   ;;  %s1423_s1 = inlined_call_operand.vmem [shape: f32[128,64], index: 1, kind: input, shape index: {}]   ;;  %s1424_s2 = inlined_call_operand.vmem [shape: f32[1,64], index: 2, kind: input, shape index: {}]   ;;  %s1425_s3 = inlined_call_operand.vmem [shape: f32[200,64], index: 3, kind: output, shape index: {}]  }
   0x1   :  { %10 = vsyncpa [#allocation3 + $0x1], 0  ;;  %s1097_s12 = smov 0   ;;  %s1099_s13 = smov 0  }
   0x2   :  { %s1101_s14 = smov 0   ;;  %s1103_s15 = smov 0  }
   0x3 LB: > { %s1116_s16 = sadd.s32 4294967295, %s1037_s15   ;;  %s1119_s17 = sadd.s32 1, %s1037_s15   ;;  %s1037_s15 = sphi %s1103_s15, %s1434_s15   ;;  %s1033_s14 = sphi %s1101_s14, %s1433_s14   ;;  %s1029_s13 = sphi %s1099_s13, %s1432_s13   ;;  %s1025_s12 = sphi %s1097_s12, %s1431_s12  }
   0x4   : > { %s20_s18 = ssub.s32 %s1037_s15, %s1119_s17  ;;  %s23_s19 = sadd.s32 1, %s1033_s14 }
   0x5   : > { %p21_p0 = scmp.eq.s32.totalorder %s20_s18, 0  ;;  %p30_p1 = scmp.ne.s32.totalorder %s1033_s14, %s1029_s13 }
   0x6   : > { %p31_p2 = scmp.eq.s32.totalorder %s1037_s15, 0  ;;  %p36_p3 = scmp.ne.s32.totalorder %s1029_s13, %s1025_s12 }
   0x7   : > { %s1129_s20 = scalar_select %p21_p0, %s1033_s14, %s23_s19  }
   0x8   : > { %p32_p4 = por %p31_p2, %p30_p1  ;;  %p37_p5 = scmp.eq.s32.totalorder %s1116_s16, 0 }
   0x9   : > { %p102_p6 = scmp.eq.s32.totalorder %s1116_s16, 1  ;;  %p672_p9 = scmp.ge.s32.totalorder %s1037_s15, 2 }
   0xa   : > { %p1133_p7 = por %p37_p5, %p36_p3 }
   0xb   : > { %p1137_p8 = por %p102_p6, %p30_p1  ;;  %130 = sbr.rel (%p672_p9) target bundleno = 53 (0x35), region = 24 }
  0x12   : > { %133 = sbr.rel (!%p32_p4) target bundleno = 53 (0x35), region = 28  ;;  %s134_s23 = sand.u32 (%p32_p4), 1, %s1033_s14  }
  0x13   : > { %s139_s24 = smul.u32 (%p32_p4), 13, %s1037_s15  ;;  %s1147_s29 = scalar_lea.sflag (%p32_p4), [#allocation3], %s134_s23 }
  0x14   : > { %s834_s25 = smul.u32 (%p32_p4), 104, %s134_s23 }
  0x15   : > { %s140_s26 = ssub.s32 (%p32_p4), 25, %s139_s24 }
  0x16   : > { %p141_p10 = scmp.lt.s32.totalorder (%p32_p4), %s140_s26, 13  ;;  %s138_s30 = scalar_lea.vmem (%p32_p4), [#allocation2], %s834_s25 }
  0x19   : > { %s1436_s26 = smov (!%p141_p10, %s140_s26), 13 }
  0x1a   : > { %s1144_s27 = sshll.u32 %s1436_s26, 7 }
  0x1b   : > { %s145_s28 = ssub.s32 1664, %s1144_s27 }
  0x1c   : > { %146 = vsyncadd %s1147_s29, %s145_s28  ;;  %p674_p11 = scmp.ne.s32.totalorder %s1144_s27, 0  ;;  %s692_s4 = smul.u32 1664, %s1037_s15 }
  0x1d   : > { %s151_s5 = sshll.u32 %s138_s30, 4  ;;  %s947_s12 = scalar_lea.hbm %s1422_s0, 3200  ;;  %s1157_s5 = int_to_ptr.vmem [resolvable:$true] %s151_s5 }
  0x1e   : > { %s1155_s8 = scalar_lea.hbm %s1422_s0, %s692_s4 }
  0x1f   : > { %s943_s9 = scalar_lea.hbm %s1155_s8, %s1144_s27  ;;  %p948_p1 = scmp.lt.u32.totalorder %s1155_s8, %s1422_s0 }
  0x20   : > { %p944_p12 = scmp.ne.s32.totalorder %s1155_s8, %s943_s9  ;;  %p949_p2 = scmp.lt.u32.totalorder %s947_s12, %s943_s9 }
  0x21   : > { %p951_p4 = scmp.lt.u32.totalorder %s943_s9, %s1155_s8 }
  0x22   : > { %p945_p13 = pnand %p944_p12, %p674_p11  ;;  %p950_p3 = por %p949_p2, %p948_p1 }
  0x24   : > { %p946_p0 = pneg %p945_p13  ;;  %p952_p5 = por %p951_p4, %p950_p3 }
  0x26   : > { %p953_p6 = pnand %p952_p5, %p946_p0 }
  0x28   : > { %956 = shalt.err (!%p953_p6)
}
  0x29   : > { %s957_s23 = scalar_lea.vmem %s1157_s5, %s1144_s27  ;;  %s1071_s24 = smov [#allocation2]  }
  0x2a   : > { %p958_p9 = scmp.ne.s32.totalorder %s1157_s5, %s957_s23  ;;  %s961_s25 = sshll.u32 %s1071_s24, 4  ;;  %s962_s25 = int_to_ptr.vmem [resolvable:$false] %s961_s25 }
  0x2b   : > { %s963_s26 = scalar_lea.vmem %s962_s25, 3328  ;;  %p964_p13 = scmp.lt.s32.totalorder %s1157_s5, %s962_s25 }
  0x2c   : > { %p959_p10 = pnand %p958_p9, %p674_p11  ;;  %p965_p1 = scmp.lt.s32.totalorder %s963_s26, %s957_s23 }
  0x2e   : > { %p960_p12 = pneg %p959_p10  ;;  %p966_p2 = por %p965_p1, %p964_p13 }
  0x30   : > { %p967_p3 = pnand %p966_p2, %p960_p12 }
  0x32   : > { %970 = shalt.err (!%p967_p3)
}
  0x33   : > { %s1072_s28 = smov 128   ;;  %s1073_s30 = smov 8  }
  0x34   : > { %157 = dma.hbm_to_vmem [thread:$0]  (%p674_p11), %s1155_s8, %s1144_s27, %s1157_s5, %s1147_s29, %s1072_s28, %s1072_s28, %s1073_s30  }
  0x35 PF: > { %p678_p0 = scmp.ge.s32.totalorder %s1037_s15, 1  ;;  %p159_p4 = scmp.lt.s32.totalorder %s1037_s15, 3 }
  0x37   : > { %p160_p5 = pnand %p678_p0, %p159_p4 }
  0x38   : > { %s165_s4 = sand.u32 (!%p160_p5), 1, %s1029_s13  }
  0x39   : > { %163 = sbr.rel (%p160_p5) target bundleno = 401 (0x191), region = 32  ;;  %s166_s7 = scalar_lea.sflag (!%p160_p5), [#allocation3], %s165_s4 }
  0x3a   : > { %s1187_s6 = smul.u32 (!%p160_p5), 104, %s165_s4 }
  0x3c   : > { %s1190_s9 = scalar_lea.vmem (!%p160_p5), [#allocation2], %s1187_s6 }
  0x40   : > { %1020 = dma.done.wait (%p1133_p7), %s166_s7, 1664  }
  0x41   : > { %1022 = vsyncadd (%p1133_p7), %s166_s7, 4294965632  ;;  %v1074_v0 = vmov 0.0|0.0   ;;  %vm1075_vm0 = vmmov 0   ;;  %v1076_v1 = vmov 0.0   ;;  %v214_v2 = vld [vmem:[%s1423_s1] sm:$0xff]  ;;  %v215_v3 = vld [vmem:[%s1423_s1 + $0x8] sm:$0xff] }
  0x42   : > { %794 = vmatprep.subr.bf16.mxu0 %v1074_v0  ;;  %818 = vmatprep.subr.bf16.mxu1 %v1074_v0  ;;  %v216_v4 = vld [vmem:[%s1423_s1 + $0x10] sm:$0xff]  ;;  %v795_v5 = vpack.c.bf16 %v215_v3, %v214_v2  ;;  %v217_v6 = vld [vmem:[%s1423_s1 + $0x18] sm:$0xff]  ;;  %v218_v8 = vld [vmem:[%s1423_s1 + $0x20] sm:$0xff]  ;;  %vm380_vm1 = vcmask 523264   ;;  %s693_s28 = smul.u32 (%p1137_p8), 104, %s1116_s16 }
  0x43   : > { %755 = vmatprep.mubr.msk.f32.mxu0 %vm1075_vm0, %v1076_v1  ;;  %776 = vmatprep.mubr.msk.f32.mxu1 %vm1075_vm0, %v1076_v1  ;;  %v798_v7 = vpack.c.bf16 %v217_v6, %v216_v4  ;;  %v219_v9 = vld [vmem:[%s1423_s1 + $0x28] sm:$0xff]  ;;  %v220_v11 = vld [vmem:[%s1423_s1 + $0x30] sm:$0xff]  ;;  %v221_v12 = vld [vmem:[%s1423_s1 + $0x38] sm:$0xff] }
  0x44   : > { %796 = vmatpush3.bf16.msra.mxu0 %v795_v5  ;;  %826 = vmatpush3.bf16.msra.mxu1 %v795_v5  ;;  %v801_v10 = vpack.c.bf16 %v219_v9, %v218_v8  ;;  %v804_v13 = vpack.c.bf16 %v221_v12, %v220_v11  ;;  %v222_v14 = vld [vmem:[%s1423_s1 + $0x40] sm:$0xff]  ;;  %v223_v15 = vld [vmem:[%s1423_s1 + $0x48] sm:$0xff]  ;;  %v224_v17 = vld [vmem:[%s1423_s1 + $0x50] sm:$0xff]  ;;  %s1337_s15 = scalar_lea.vmem (%p1137_p8), %s1425_s3, %s693_s28  }
  0x45   : > { %797 = vmatprep.subr.bf16.mxu0 %v1074_v0  ;;  %819 = vmatprep.subr.bf16.mxu1 %v1074_v0  ;;  %v807_v16 = vpack.c.bf16 %v223_v15, %v222_v14  ;;  %v225_v18 = vld [vmem:[%s1423_s1 + $0x58] sm:$0xff]  ;;  %v226_v20 = vld [vmem:[%s1423_s1 + $0x60] sm:$0xff]  ;;  %v227_v21 = vld [vmem:[%s1423_s1 + $0x68] sm:$0xff] }
  0x46   : > { %v810_v19 = vpack.c.bf16 %v225_v18, %v224_v17  ;;  %v813_v22 = vpack.c.bf16 %v227_v21, %v226_v20  ;;  %v228_v23 = vld [vmem:[%s1423_s1 + $0x70] sm:$0xff]  ;;  %v229_v24 = vld [vmem:[%s1423_s1 + $0x78] sm:$0xff]  ;;  %v201_v26 = vld [vmem:[%s1190_s9] sm:$0xff] }
  0x47   : > { %v816_v25 = vpack.c.bf16 %v229_v24, %v228_v23  ;;  %v208_v27 = vld [vmem:[%s1190_s9 + $0x38] sm:$0xff]  ;;  %v202_v28 = vld [vmem:[%s1190_s9 + $0x8] sm:$0xff]  ;;  %v209_v29 = vld [vmem:[%s1190_s9 + $0x40] sm:$0xff] }
  0x48   : > { %799 = vmatpush3.bf16.msra.mxu0 %v798_v7  ;;  %827 = vmatpush3.bf16.msra.mxu1 %v798_v7  ;;  %v203_v30 = vld [vmem:[%s1190_s9 + $0x10] sm:$0xff]  ;;  %v210_v31 = vld [vmem:[%s1190_s9 + $0x48] sm:$0xff]  ;;  %v204_v32 = vld [vmem:[%s1190_s9 + $0x18] sm:$0xff] }
  0x49   : > { %800 = vmatprep.subr.bf16.mxu0 %v1074_v0  ;;  %820 = vmatprep.subr.bf16.mxu1 %v1074_v0  ;;  %v211_v33 = vld [vmem:[%s1190_s9 + $0x50] sm:$0xff]  ;;  %v205_v34 = vld [vmem:[%s1190_s9 + $0x20] sm:$0xff]  ;;  %v212_v35 = vld [vmem:[%s1190_s9 + $0x58] sm:$0xff] }
  0x4a   : > { %v206_v36 = vld [vmem:[%s1190_s9 + $0x28] sm:$0xff]  ;;  %v213_v37 = vld [vmem:[%s1190_s9 + $0x60] sm:$0xff]  ;;  %v207_v38 = vld [vmem:[%s1190_s9 + $0x30] sm:$0xff]  ;;  %s1291_s9 = scalar_lea.vmem [#allocation4], %s1187_s6   ;;  %s401_s6 = smul.u32 (%p1137_p8), 13, %s1116_s16 }
  0x4b   : > { %v1286_v39 = vld [vmem:[%s1424_s2] ss:$0 sm:$0xff] }
  0x4c   : > { %802 = vmatpush3.bf16.msra.mxu0 %v801_v10  ;;  %828 = vmatpush3.bf16.msra.mxu1 %v801_v10  ;;  %s402_s30 = ssub.s32 (%p1137_p8), 25, %s401_s6 }
  0x4d   : > { %803 = vmatprep.subr.bf16.mxu0 %v1074_v0  ;;  %821 = vmatprep.subr.bf16.mxu1 %v1074_v0  ;;  %p403_p7 = scmp.lt.s32.totalorder (%p1137_p8), %s402_s30, 13 }
  0x50   : > { %805 = vmatpush3.bf16.msra.mxu0 %v804_v13  ;;  %829 = vmatpush3.bf16.msra.mxu1 %v804_v13 }
  0x51   : > { %806 = vmatprep.subr.bf16.mxu0 %v1074_v0  ;;  %822 = vmatprep.subr.bf16.mxu1 %v1074_v0 }
  0x54   : > { %808 = vmatpush3.bf16.msra.mxu0 %v807_v16  ;;  %830 = vmatpush3.bf16.msra.mxu1 %v807_v16 }
  0x55   : > { %809 = vmatprep.subr.bf16.mxu0 %v1074_v0  ;;  %823 = vmatprep.subr.bf16.mxu1 %v1074_v0 }
  0x58   : > { %811 = vmatpush3.bf16.msra.mxu0 %v810_v19  ;;  %831 = vmatpush3.bf16.msra.mxu1 %v810_v19 }
  0x59   : > { %812 = vmatprep.subr.bf16.mxu0 %v1074_v0  ;;  %824 = vmatprep.subr.bf16.mxu1 %v1074_v0 }
  0x5c   : > { %814 = vmatpush3.bf16.msra.mxu0 %v813_v22  ;;  %832 = vmatpush3.bf16.msra.mxu1 %v813_v22 }
  0x5d   : > { %815 = vmatprep.subr.bf16.mxu0 %v1074_v0  ;;  %825 = vmatprep.subr.bf16.mxu1 %v1074_v0 }
  0x60   : > { %817 = vmatpush3.bf16.msra.mxu0 %v816_v25  ;;  %833 = vmatpush3.bf16.msra.mxu1 %v816_v25 }
  0x63   : > { %756 = vmatmul.mubr.f32.vlgmr.msra.gmra.mrb[0].mxu0 %v201_v26  ;;  %777 = vmatmul.mubr.f32.vlgmr.msra.gmra.mrb[0].mxu1 %v208_v27 }
  0x64   : > { %758 = vmatprep.mubr.msk.f32.mxu0 %vm1075_vm0, %v1076_v1  ;;  %779 = vmatprep.mubr.msk.f32.mxu1 %vm1075_vm0, %v1076_v1 }
  0x67   : > { %759 = vmatmul.mubr.f32.gmra.mrb[2].mxu0 %v202_v28  ;;  %780 = vmatmul.mubr.f32.gmra.mrb[2].mxu1 %v209_v29 }
  0x68   : > { %761 = vmatprep.mubr.msk.f32.mxu0 %vm1075_vm0, %v1076_v1  ;;  %782 = vmatprep.mubr.msk.f32.mxu1 %vm1075_vm0, %v1076_v1 }
  0x6b   : > { %762 = vmatmul.mubr.f32.gmra.mrb[4].mxu0 %v203_v30  ;;  %783 = vmatmul.mubr.f32.gmra.mrb[4].mxu1 %v210_v31 }
  0x6c   : > { %764 = vmatprep.mubr.msk.f32.mxu0 %vm1075_vm0, %v1076_v1  ;;  %785 = vmatprep.mubr.msk.f32.mxu1 %vm1075_vm0, %v1076_v1 }
  0x6f   : > { %765 = vmatmul.mubr.f32.gmra.mrb[6].mxu0 %v204_v32  ;;  %786 = vmatmul.mubr.f32.gmra.mrb[6].mxu1 %v211_v33 }
  0x70   : > { %767 = vmatprep.mubr.msk.f32.mxu0 %vm1075_vm0, %v1076_v1  ;;  %788 = vmatprep.mubr.msk.f32.mxu1 %vm1075_vm0, %v1076_v1 }
  0x73   : > { %768 = vmatmul.mubr.f32.gmra.mrb[8].mxu0 %v205_v34  ;;  %789 = vmatmul.mubr.f32.gmra.mrb[8].mxu1 %v212_v35 }
  0x74   : > { %770 = vmatprep.mubr.msk.f32.mxu0 %vm1075_vm0, %v1076_v1  ;;  %791 = vmatprep.mubr.msk.f32.mxu1 %vm1075_vm0, %v1076_v1 }
  0x77   : > { %771 = vmatmul.mubr.f32.gmra.mrb[10].mxu0 %v206_v36  ;;  %792 = vmatmul.mubr.f32.gmra.mrb[10].mxu1 %v213_v37 }
  0x78   : > { %773 = vmatprep.mubr.msk.f32.mxu0 %vm1075_vm0, %v1076_v1 }
  0x7b   : > { %774 = vmatmul.mubr.f32.gmra.mrb[12].mxu0 %v207_v38 }
 0x136   : > { %v303_v40 = vpop.f32.mrb[0].mxu0  ;;  %v338_v41 = vpop.f32.mrb[0].mxu1 }
 0x137   : > { %v304_v42 = vadd.f32 %v1286_v39, %v303_v40  ;;  %v757_v43 = vpop.f32.mrb[1].mxu0  ;;  %v339_v44 = vadd.f32 %v1286_v39, %v338_v41  ;;  %v778_v45 = vpop.f32.mrb[1].mxu1 }
 0x139   : > { %v367_v46 = vmax.f32 %v304_v42, 0.0  ;;  %v374_v47 = vmax.f32 %v339_v44, 0.0 }
 0x13a   : > { %v308_v48 = vpop.f32.mrb[2].mxu0  ;;  %v343_v49 = vpop.f32.mrb[2].mxu1 }
 0x13b   : > { %381 = vst.msk [vmem:[%s1291_s9] sm:$0xff] %vm380_vm1, %v367_v46  ;;  %388 = vst.msk [vmem:[%s1291_s9 + $0x38] sm:$0xff] %vm380_vm1, %v374_v47  ;;  %v309_v50 = vadd.f32 %v1286_v39, %v308_v48  ;;  %v760_v51 = vpop.f32.mrb[3].mxu0  ;;  %v344_v52 = vadd.f32 %v1286_v39, %v343_v49  ;;  %v781_v53 = vpop.f32.mrb[3].mxu1 }
 0x13d   : > { %v368_v54 = vmax.f32 %v309_v50, 0.0  ;;  %v375_v55 = vmax.f32 %v344_v52, 0.0 }
 0x13e   : > { %v313_v56 = vpop.f32.mrb[4].mxu0  ;;  %v348_v57 = vpop.f32.mrb[4].mxu1 }
 0x13f   : > { %382 = vst.msk [vmem:[%s1291_s9 + $0x8] sm:$0xff] %vm380_vm1, %v368_v54  ;;  %389 = vst.msk [vmem:[%s1291_s9 + $0x40] sm:$0xff] %vm380_vm1, %v375_v55  ;;  %v314_v58 = vadd.f32 %v1286_v39, %v313_v56  ;;  %v763_v59 = vpop.f32.mrb[5].mxu0  ;;  %v349_v60 = vadd.f32 %v1286_v39, %v348_v57  ;;  %v784_v61 = vpop.f32.mrb[5].mxu1 }
 0x141   : > { %v369_v62 = vmax.f32 %v314_v58, 0.0  ;;  %v376_v63 = vmax.f32 %v349_v60, 0.0 }
 0x142   : > { %v318_v0 = vpop.f32.mrb[6].mxu0  ;;  %v353_v1 = vpop.f32.mrb[6].mxu1 }
 0x143   : > { %383 = vst.msk [vmem:[%s1291_s9 + $0x10] sm:$0xff] %vm380_vm1, %v369_v62  ;;  %390 = vst.msk [vmem:[%s1291_s9 + $0x48] sm:$0xff] %vm380_vm1, %v376_v63  ;;  %v319_v2 = vadd.f32 %v1286_v39, %v318_v0  ;;  %v766_v3 = vpop.f32.mrb[7].mxu0  ;;  %v354_v4 = vadd.f32 %v1286_v39, %v353_v1  ;;  %v787_v5 = vpop.f32.mrb[7].mxu1 }
 0x145   : > { %v370_v6 = vmax.f32 %v319_v2, 0.0  ;;  %v377_v7 = vmax.f32 %v354_v4, 0.0 }
 0x146   : > { %v323_v8 = vpop.f32.mrb[8].mxu0  ;;  %v358_v9 = vpop.f32.mrb[8].mxu1 }
 0x147   : > { %384 = vst.msk [vmem:[%s1291_s9 + $0x18] sm:$0xff] %vm380_vm1, %v370_v6  ;;  %391 = vst.msk [vmem:[%s1291_s9 + $0x50] sm:$0xff] %vm380_vm1, %v377_v7  ;;  %v324_v10 = vadd.f32 %v1286_v39, %v323_v8  ;;  %v769_v11 = vpop.f32.mrb[9].mxu0  ;;  %v359_v12 = vadd.f32 %v1286_v39, %v358_v9  ;;  %v790_v13 = vpop.f32.mrb[9].mxu1 }
 0x149   : > { %v371_v14 = vmax.f32 %v324_v10, 0.0  ;;  %v378_v15 = vmax.f32 %v359_v12, 0.0 }
 0x14a   : > { %v328_v16 = vpop.f32.mrb[10].mxu0  ;;  %v363_v17 = vpop.f32.mrb[10].mxu1 }
 0x14b   : > { %385 = vst.msk [vmem:[%s1291_s9 + $0x20] sm:$0xff] %vm380_vm1, %v371_v14  ;;  %392 = vst.msk [vmem:[%s1291_s9 + $0x58] sm:$0xff] %vm380_vm1, %v378_v15  ;;  %v329_v18 = vadd.f32 %v1286_v39, %v328_v16  ;;  %v772_v19 = vpop.f32.mrb[11].mxu0  ;;  %v364_v20 = vadd.f32 %v1286_v39, %v363_v17  ;;  %v793_v21 = vpop.f32.mrb[11].mxu1 }
 0x14d   : > { %v372_v22 = vmax.f32 %v329_v18, 0.0  ;;  %v379_v23 = vmax.f32 %v364_v20, 0.0  ;;  %400 = sbr.rel (!%p1137_p8) target bundleno = 401 (0x191), region = 40 }
 0x14e   : > { %v333_v24 = vpop.f32.mrb[12].mxu0 }
 0x14f   : > { %386 = vst.msk [vmem:[%s1291_s9 + $0x28] sm:$0xff] %vm380_vm1, %v372_v22  ;;  %393 = vst.msk [vmem:[%s1291_s9 + $0x60] sm:$0xff] %vm380_vm1, %v379_v23  ;;  %v334_v25 = vadd.f32 %v1286_v39, %v333_v24  ;;  %v775_v26 = vpop.f32.mrb[13].mxu0 }
 0x151   : > { %v373_v27 = vmax.f32 %v334_v25, 0.0 }
 0x153   : > { %387 = vst.msk [vmem:[%s1291_s9 + $0x30] sm:$0xff] %vm380_vm1, %v373_v27 }
 0x154   : > { %s1438_s30 = smov (!%p403_p7, %s402_s30), 13 }
 0x155   : > { %s680_s27 = sshll.u32 %s1438_s30, 7 }
 0x156   : > { %p683_p11 = scmp.eq.s32.totalorder %s680_s27, 0 }
 0x157   : > { %939 = sdivrem.u32 (!%p683_p11), %s1438_s30, 13 }
 0x158   : > { %411 = sbr.rel (%p683_p11) target bundleno = 401 (0x191), region = 44 }
 0x160   : > { %s1343_s22 = spop.drf %939 }
 0x161   : > { %p684_p8 = scmp.le.s32.totalorder %s1343_s22, 0 }
 0x162   : > { %s1428_s16 = smov (!%p684_p8), %s1337_s15  ;;  %s1429_s29 = smov (!%p684_p8), %s1291_s9 }
 0x163   : > { %623 = sbr.rel (%p684_p8) target bundleno = 372 (0x174), region = 126  ;;  %s1352_s5 = smov (!%p684_p8), 0  }
 0x164   : > { %s1354_s21 = smov (!%p684_p8), 0  }
 0x16a LB: >> { %v499_v28 = vld [vmem:[%s1045_s29] sm:$0xff]  ;;  %v501_v29 = vld [vmem:[%s1045_s29 + $0x8] sm:$0xff]  ;;  %v503_v30 = vld [vmem:[%s1045_s29 + $0x10] sm:$0xff]  ;;  %s525_s8 = sadd.s32 1, %s1049_s5  ;;  %s493_s21 = sadd.s32 1, %s1053_s21   ;;  %s1053_s21 = sphi %s1354_s21, %s493_s21   ;;  %s1049_s5 = sphi %s1352_s5, %s1430_s5   ;;  %s1045_s29 = sphi %s1429_s29, %s530_s29   ;;  %s1041_s16 = sphi %s1428_s16, %s531_s16  }
 0x16b   : >> { %500 = vst [vmem:[%s1041_s16] sm:$0xff] %v499_v28  ;;  %502 = vst [vmem:[%s1041_s16 + $0x8] sm:$0xff] %v501_v29  ;;  %v505_v31 = vld [vmem:[%s1045_s29 + $0x18] sm:$0xff]  ;;  %v507_v32 = vld [vmem:[%s1045_s29 + $0x20] sm:$0xff]  ;;  %p526_p6 = scmp.ge.s32.totalorder %s525_s8, %s1343_s22  ;;  %p492_p9 = scmp.ge.s32.totalorder %s493_s21, %s1343_s22 }
 0x16c   : >> { %504 = vst [vmem:[%s1041_s16 + $0x10] sm:$0xff] %v503_v30  ;;  %v509_v33 = vld [vmem:[%s1045_s29 + $0x28] sm:$0xff]  ;;  %506 = vst [vmem:[%s1041_s16 + $0x18] sm:$0xff] %v505_v31  ;;  %v511_v34 = vld [vmem:[%s1045_s29 + $0x30] sm:$0xff] }
 0x16d   : >> { %508 = vst [vmem:[%s1041_s16 + $0x20] sm:$0xff] %v507_v32  ;;  %510 = vst [vmem:[%s1041_s16 + $0x28] sm:$0xff] %v509_v33  ;;  %v513_v35 = vld [vmem:[%s1045_s29 + $0x38] sm:$0xff]  ;;  %v515_v36 = vld [vmem:[%s1045_s29 + $0x40] sm:$0xff]  ;;  %s1440_s8 = smov (%p526_p6, %s525_s8), 0  ;;  %495 = sbr.rel (!%p492_p9) target bundleno = 362 (0x16a), region = 132 }
 0x16e   : >> { %512 = vst [vmem:[%s1041_s16 + $0x30] sm:$0xff] %v511_v34  ;;  %514 = vst [vmem:[%s1041_s16 + $0x38] sm:$0xff] %v513_v35  ;;  %v517_v37 = vld [vmem:[%s1045_s29 + $0x48] sm:$0xff]  ;;  %v519_v38 = vld [vmem:[%s1045_s29 + $0x50] sm:$0xff]  ;;  %s528_s10 = smul.u32 104, %s1440_s8  ;;  %s1430_s5 = smov %s1440_s8 }
 0x16f   : >> { %516 = vst [vmem:[%s1041_s16 + $0x40] sm:$0xff] %v515_v36  ;;  %v521_v39 = vld [vmem:[%s1045_s29 + $0x58] sm:$0xff]  ;;  %518 = vst [vmem:[%s1041_s16 + $0x48] sm:$0xff] %v517_v37  ;;  %v523_v40 = vld [vmem:[%s1045_s29 + $0x60] sm:$0xff] }
 0x170   : >> { %520 = vst [vmem:[%s1041_s16 + $0x50] sm:$0xff] %v519_v38  ;;  %522 = vst [vmem:[%s1041_s16 + $0x58] sm:$0xff] %v521_v39  ;;  %s530_s29 = scalar_lea.vmem %s1291_s9, %s528_s10 [#allocation4]  }
 0x171   : >> { %524 = vst [vmem:[%s1041_s16 + $0x60] sm:$0xff] %v523_v40  ;;  %s531_s16 = scalar_lea.vmem %s1337_s15, %s528_s10  }
 0x174 PF: > { %941 = sdivrem.u32 %s1438_s30, 13 }
 0x175   : > { %s685_s11 = smul.u32 104, %s1343_s22 }
 0x177   : > { %s536_s12 = scalar_lea.vmem %s1291_s9, %s685_s11 [#allocation4]   ;;  %s538_s18 = scalar_lea.vmem %s1337_s15, %s685_s11  }
 0x17d   : > { %s942_s19 = spop.drf %941 }
 0x17e   : > { %p687_p10 = scmp.le.s32.totalorder %s942_s19, 0 }
 0x17f   : > { %s1055_s23 = smov (!%p687_p10), %s538_s18   ;;  %s1059_s24 = smov (!%p687_p10), %s536_s12  }
 0x180   : > { %637 = sbr.rel (%p687_p10) target bundleno = 401 (0x191), region = 137  ;;  %s1063_s25 = smov (!%p687_p10), 0  }
 0x181   : > { %s1067_s26 = smov (!%p687_p10), 0  }
 0x187 LB: >> { %v548_v41 = vld [vmem:[%s1061_s24] sm:$0xff]  ;;  %s550_s6 = sadd.s32 1, %s1065_s25  ;;  %s542_s26 = sadd.s32 1, %s1069_s26   ;;  %s1069_s26 = sphi %s1067_s26, %s542_s26   ;;  %s1065_s25 = sphi %s1063_s25, %s1064_s25   ;;  %s1061_s24 = sphi %s1059_s24, %s555_s24   ;;  %s1057_s23 = sphi %s1055_s23, %s556_s23  }
 0x188   : >> { %549 = vst [vmem:[%s1057_s23] sm:$0xff] %v548_v41  ;;  %p551_p12 = scmp.ge.s32.totalorder %s550_s6, %s942_s19  ;;  %p541_p13 = scmp.ge.s32.totalorder %s542_s26, %s942_s19 }
 0x18a   : >> { %s1442_s6 = smov (%p551_p12, %s550_s6), 0  ;;  %544 = sbr.rel (!%p541_p13) target bundleno = 391 (0x187), region = 143 }
 0x18b   : >> { %s688_s9 = sshll.u32 %s1442_s6, 3  ;;  %s1064_s25 = smov %s1442_s6  }
 0x18c   : >> { %s555_s24 = scalar_lea.vmem %s536_s12, %s688_s9 [#allocation4]   ;;  %s556_s23 = scalar_lea.vmem %s538_s18, %s688_s9  }
 0x191 PF: > { %p13_p1 = scmp.ge.s32.totalorder %s1119_s17, 4   ;;  %s1431_s12 = smov %s1029_s13 }
 0x192   : > { %s1432_s13 = smov %s1033_s14  ;;  %s1433_s14 = smov %s1129_s20 }
 0x193   : > { %s1434_s15 = smov %s1119_s17  ;;  %15 = sbr.rel (!%p13_p1) target bundleno = 3 (0x3), region = 154 }
 0x19a   :  { %572 = vsyncpa [#allocation3], 1 }
 0x19b   :  { %574 = vsyncpa [#allocation3 + $0x1], 1 }

</bundles_post_ra>
